<compile_context>
chip_gen: v7x
topology: tpu7x:2x2x1
jax: 0.10.0
libtpu: 0.0.40
codegen_flags: <defaults>
</compile_context>

<pallas_src>
import jax
import jax.numpy as jnp
from jax.experimental import pallas as pl
from jax.experimental.pallas import tpu as pltpu

_PACK = 8  # batch rows packed along the lane axis


def _critic_kernel(s_ref, a_ref, w1s_ref, w1a_ref, b1_ref,
                   w2_ref, b2_ref, w3_ref, b3_ref, o_ref):
    # Layer 1: Linear(S+A, 32) + ReLU.  The dim=1 concat is fused as two MXU
    # pushes into the same f32 accumulator (no HBM concat).
    h1 = jnp.dot(s_ref[...], w1s_ref[...], preferred_element_type=jnp.float32)
    h1 = h1 + jnp.dot(a_ref[...], w1a_ref[...], preferred_element_type=jnp.float32)
    h1 = jnp.maximum(h1 + b1_ref[...], 0.0)

    # Layer 2: Linear(32, 32) + ReLU (block-diagonal over the 8 packed rows).
    h2 = jnp.dot(h1, w2_ref[...], preferred_element_type=jnp.float32)
    h2 = jnp.maximum(h2 + b2_ref[...], 0.0)

    # Layer 3: Linear(32, 1) -> one scalar per packed row (8 output lanes).
    out = jnp.dot(h2, w3_ref[...], preferred_element_type=jnp.float32)
    o_ref[...] = (out + b3_ref[...]).astype(o_ref.dtype)


def critic_forward(states, actions, params, *, tile_b=16384,
                   input_dtype=jnp.float32):
    """states: (B, S) f32, actions: (B, A) f32 -> (B, 1) f32."""
    w1, b1, w2, b2, w3, b3 = params
    in_dim, hidden = w1.shape
    B, S = states.shape
    A = actions.shape[1]
    assert S + A == in_dim

    P = _PACK
    # Pad the batch to a multiple of 8 only when required by the lane-pack
    # reshape (typical replay batches 64/128/.../16384 never hit this).
    B8 = ((B + P - 1) // P) * P
    if B8 != B:
        states = jnp.pad(states, ((0, B8 - B), (0, 0)))
        actions = jnp.pad(actions, ((0, B8 - B), (0, 0)))
    Bp = B8 // P

    # Lane-dense packing: contiguous reshape (B, D) -> (B/8, 8*D) == free.
    s_p = states.astype(input_dtype).reshape(Bp, P * S)
    a_p = actions.astype(input_dtype).reshape(Bp, P * A)

    # 8-way block-diagonal weights (built once per call; a few hundred KiB).
    w1f = w1.astype(jnp.float32)
    eye = jnp.eye(P, dtype=jnp.float32)
    w1s_blk = jnp.kron(eye, w1f[:S]).astype(input_dtype)      # (8S, 8H)
    w1a_blk = jnp.kron(eye, w1f[S:]).astype(input_dtype)      # (8A, 8H)
    w2_blk = jnp.kron(eye, w2.astype(jnp.float32))            # (8H, 8H)
    w3_blk = jnp.kron(eye, w3.astype(jnp.float32))            # (8H, 8)
    b1_t = jnp.tile(b1.reshape(1, hidden).astype(jnp.float32), (1, P))
    b2_t = jnp.tile(b2.reshape(1, hidden).astype(jnp.float32), (1, P))
    b3_t = b3.reshape(1, 1).astype(jnp.float32)

    # Batch tile (in packed rows).  Keep the grid multi-block for large
    # batches; let Pallas mask the ragged last block instead of padding HBM.
    tbp = max(1, int(tile_b) // P)
    tbp = max(8, (tbp // 8) * 8)              # sublane granule
    if tbp >= Bp:
        tbp = Bp                              # single full-dim block is legal
    grid_b = pl.cdiv(Bp, tbp)

    in_bytes = jnp.dtype(input_dtype).itemsize
    flops = 2 * B8 * hidden * (in_dim + hidden + 1)
    bytes_accessed = int(
        B8 * in_dim * in_bytes + B8 * 4
        + (P * S * P * hidden + P * A * P * hidden
           + P * hidden * P * hidden + P * hidden * P + 2 * P * hidden + 1) * 4)

    def const_spec(shape):                    # VMEM-resident parameter block
        return pl.BlockSpec(shape, lambda i: (0,) * len(shape))

    out_p = pl.pallas_call(
        _critic_kernel,
        out_shape=jax.ShapeDtypeStruct((Bp, P), jnp.float32),
        grid=(grid_b,),
        in_specs=[
            pl.BlockSpec((tbp, P * S), lambda i: (i, 0)),    # packed states
            pl.BlockSpec((tbp, P * A), lambda i: (i, 0)),    # packed actions
            const_spec((P * S, P * hidden)),                 # w1 (state part)
            const_spec((P * A, P * hidden)),                 # w1 (action part)
            const_spec((1, P * hidden)),                     # b1
            const_spec((P * hidden, P * hidden)),            # w2
            const_spec((1, P * hidden)),                     # b2
            const_spec((P * hidden, P)),                     # w3
            const_spec((1, 1)),                              # b3
        ],
        out_specs=pl.BlockSpec((tbp, P), lambda i: (i, 0)),
        compiler_params=pltpu.CompilerParams(
            dimension_semantics=("parallel",),
            vmem_limit_bytes=48 * 1024 * 1024),
        cost_estimate=pl.CostEstimate(flops=flops, transcendentals=0,
                                      bytes_accessed=bytes_accessed),
    )(s_p, a_p, w1s_blk, w1a_blk, b1_t, w2_blk, b2_t, w3_blk, b3_t)

    # Free un-pack: (B/8, 8) -> (B8, 1), then drop pad rows.
    return out_p.reshape(B8, 1)[:B]


def init_params(key, state_size_total, action_size_total, hidden=32):
    """Deterministic synthetic init (PyTorch Linear-style uniform bounds)."""
    in1 = state_size_total + action_size_total
    ks = jax.random.split(key, 6)

    def unif(k, shape, fan_in):
        bound = 1.0 / jnp.sqrt(fan_in)
        return jax.random.uniform(k, shape, jnp.float32, -bound, bound)

    # Stored as (in, out) so the math is x @ W + b.
    w1 = unif(ks[0], (in1, hidden), in1)
    b1 = unif(ks[1], (1, hidden), in1)
    w2 = unif(ks[2], (hidden, hidden), hidden)
    b2 = unif(ks[3], (1, hidden), hidden)
    w3 = unif(ks[4], (hidden, 1), hidden)
    b3 = unif(ks[5], (1, 1), hidden)
    return (w1, b1, w2, b2, w3, b3)


def critic_reference(states, actions, params):
    """Plain JAX reference for correctness checking."""
    w1, b1, w2, b2, w3, b3 = params
    x = jnp.concatenate([states, actions], axis=1)
    h1 = jnp.maximum(x @ w1 + b1, 0.0)
    h2 = jnp.maximum(h1 @ w2 + b2, 0.0)
    return h2 @ w3 + b3


if __name__ == "__main__":
    state_size_total = 12      # total state dim across agents
    action_size_total = 4      # total action dim across agents

    key = jax.random.PRNGKey(0)
    k_s, k_a, k_p = jax.random.split(key, 3)
    params = init_params(k_p, state_size_total, action_size_total)

    # Small single-block case.
    B = 8
    states = jax.random.normal(k_s, (B, state_size_total), jnp.float32)
    actions = jax.random.normal(k_a, (B, action_size_total), jnp.float32)
    out = jax.block_until_ready(critic_forward(states, actions, params))
    ref = critic_reference(states, actions, params)
    assert out.shape == (B, 1), out.shape
    assert jnp.allclose(out, ref, atol=1e-5, rtol=1e-5), (out, ref)

    # Multi-block case with a ragged last tile (exercises the tiled grid).
    B2 = 200
    states2 = jax.random.normal(k_s, (B2, state_size_total), jnp.float32)
    actions2 = jax.random.normal(k_a, (B2, action_size_total), jnp.float32)
    out2 = jax.block_until_ready(
        critic_forward(states2, actions2, params, tile_b=64))
    ref2 = critic_reference(states2, actions2, params)
    assert out2.shape == (B2, 1), out2.shape
    assert jnp.allclose(out2, ref2, atol=1e-5, rtol=1e-5)

    print("KERNEL_OK")
</pallas_src>

<mosaic_0001>
module attributes {stable_mosaic.version = 11 : i64} {
  func.func @_critic_kernel(%arg0: i32, %arg1: memref<1x96xf32, #tpu.memory_space<vmem>>, %arg2: memref<1x32xf32, #tpu.memory_space<vmem>>, %arg3: memref<96x256xf32, #tpu.memory_space<vmem>>, %arg4: memref<32x256xf32, #tpu.memory_space<vmem>>, %arg5: memref<1x256xf32, #tpu.memory_space<vmem>>, %arg6: memref<256x256xf32, #tpu.memory_space<vmem>>, %arg7: memref<1x256xf32, #tpu.memory_space<vmem>>, %arg8: memref<256x8xf32, #tpu.memory_space<vmem>>, %arg9: memref<1x1xf32, #tpu.memory_space<vmem>>, %arg10: memref<1x8xf32, #tpu.memory_space<vmem>>) attributes {dimension_semantics = [#tpu.dimension_semantics<parallel>], iteration_bounds = array<i64: 1>, scalar_prefetch = 0 : i64, scratch_operands = 0 : i64, tpu.core_type = #tpu.core_type<tc>, window_params = [{transform_indices = @transform_0, window_bounds = array<i64: 1, 96>}, {transform_indices = @transform_1, window_bounds = array<i64: 1, 32>}, {pipeline_mode = #tpu.pipeline_mode<synchronous>, transform_indices = @transform_2, window_bounds = array<i64: 96, 256>}, {pipeline_mode = #tpu.pipeline_mode<synchronous>, transform_indices = @transform_3, window_bounds = array<i64: 32, 256>}, {pipeline_mode = #tpu.pipeline_mode<synchronous>, transform_indices = @transform_4, window_bounds = array<i64: 1, 256>}, {pipeline_mode = #tpu.pipeline_mode<synchronous>, transform_indices = @transform_5, window_bounds = array<i64: 256, 256>}, {pipeline_mode = #tpu.pipeline_mode<synchronous>, transform_indices = @transform_6, window_bounds = array<i64: 1, 256>}, {pipeline_mode = #tpu.pipeline_mode<synchronous>, transform_indices = @transform_7, window_bounds = array<i64: 256, 8>}, {pipeline_mode = #tpu.pipeline_mode<synchronous>, transform_indices = @transform_8, window_bounds = array<i64: 1, 1>}, {transform_indices = @transform_9, window_bounds = array<i64: 1, 8>}]} {
    %c0 = arith.constant 0 : index
    %c0_0 = arith.constant 0 : index
    %0 = vector.load %arg1[%c0, %c0_0] : memref<1x96xf32, #tpu.memory_space<vmem>>, vector<1x96xf32>
    %c0_1 = arith.constant 0 : index
    %c0_2 = arith.constant 0 : index
    %1 = vector.load %arg3[%c0_1, %c0_2] : memref<96x256xf32, #tpu.memory_space<vmem>>, vector<96x256xf32>
    %cst = arith.constant dense<0.000000e+00> : vector<1x256xf32>
    %2 = tpu.matmul %0, %1, %cst {dimension_numbers = #tpu.dot_dimension_numbers<[1], [0], [0], [1], [0, 0, 1, 1], [], []>} : vector<1x96xf32>, vector<96x256xf32>, vector<1x256xf32> -> vector<1x256xf32>
    %c0_3 = arith.constant 0 : index
    %c0_4 = arith.constant 0 : index
    %3 = vector.load %arg2[%c0_3, %c0_4] : memref<1x32xf32, #tpu.memory_space<vmem>>, vector<1x32xf32>
    %c0_5 = arith.constant 0 : index
    %c0_6 = arith.constant 0 : index
    %4 = vector.load %arg4[%c0_5, %c0_6] : memref<32x256xf32, #tpu.memory_space<vmem>>, vector<32x256xf32>
    %cst_7 = arith.constant dense<0.000000e+00> : vector<1x256xf32>
    %5 = tpu.matmul %3, %4, %cst_7 {dimension_numbers = #tpu.dot_dimension_numbers<[1], [0], [0], [1], [0, 0, 1, 1], [], []>} : vector<1x32xf32>, vector<32x256xf32>, vector<1x256xf32> -> vector<1x256xf32>
    %6 = arith.addf %2, %5 : vector<1x256xf32>
    %c0_8 = arith.constant 0 : index
    %c0_9 = arith.constant 0 : index
    %7 = vector.load %arg5[%c0_8, %c0_9] : memref<1x256xf32, #tpu.memory_space<vmem>>, vector<1x256xf32>
    %8 = arith.addf %6, %7 : vector<1x256xf32>
    %cst_10 = arith.constant 0.000000e+00 : f32
    %9 = vector.broadcast %cst_10 : f32 to vector<1x256xf32>
    %10 = arith.maximumf %8, %9 : vector<1x256xf32>
    %c0_11 = arith.constant 0 : index
    %c0_12 = arith.constant 0 : index
    %11 = vector.load %arg6[%c0_11, %c0_12] : memref<256x256xf32, #tpu.memory_space<vmem>>, vector<256x256xf32>
    %cst_13 = arith.constant dense<0.000000e+00> : vector<1x256xf32>
    %12 = tpu.matmul %10, %11, %cst_13 {dimension_numbers = #tpu.dot_dimension_numbers<[1], [0], [0], [1], [0, 0, 1, 1], [], []>} : vector<1x256xf32>, vector<256x256xf32>, vector<1x256xf32> -> vector<1x256xf32>
    %c0_14 = arith.constant 0 : index
    %c0_15 = arith.constant 0 : index
    %13 = vector.load %arg7[%c0_14, %c0_15] : memref<1x256xf32, #tpu.memory_space<vmem>>, vector<1x256xf32>
    %14 = arith.addf %12, %13 : vector<1x256xf32>
    %cst_16 = arith.constant 0.000000e+00 : f32
    %15 = vector.broadcast %cst_16 : f32 to vector<1x256xf32>
    %16 = arith.maximumf %14, %15 : vector<1x256xf32>
    %c0_17 = arith.constant 0 : index
    %c0_18 = arith.constant 0 : index
    %17 = vector.load %arg8[%c0_17, %c0_18] : memref<256x8xf32, #tpu.memory_space<vmem>>, vector<256x8xf32>
    %cst_19 = arith.constant dense<0.000000e+00> : vector<1x8xf32>
    %18 = tpu.matmul %16, %17, %cst_19 {dimension_numbers = #tpu.dot_dimension_numbers<[1], [0], [0], [1], [0, 0, 1, 1], [], []>} : vector<1x256xf32>, vector<256x8xf32>, vector<1x8xf32> -> vector<1x8xf32>
    %c0_20 = arith.constant 0 : index
    %c0_21 = arith.constant 0 : index
    %19 = vector.load %arg9[%c0_20, %c0_21] : memref<1x1xf32, #tpu.memory_space<vmem>>, vector<1x1xf32>
    %20 = vector.broadcast %19 : vector<1x1xf32> to vector<1x8xf32>
    %21 = arith.addf %18, %20 : vector<1x8xf32>
    %c0_22 = arith.constant 0 : index
    %c0_23 = arith.constant 0 : index
    %22 = vector.load %arg10[%c0_22, %c0_23] : memref<1x8xf32, #tpu.memory_space<vmem>>, vector<1x8xf32>
    tpu.vector_store %arg10[%c0_22, %c0_23], %21 {strides = array<i32>} : memref<1x8xf32, #tpu.memory_space<vmem>>, vector<1x8xf32>,
    return
  }
  func.func @transform_0(%arg0: i32) -> (i32, i32) {
    %c0_i32 = arith.constant 0 : i32
    %c0_i32_0 = arith.constant 0 : i32
    return %arg0, %c0_i32 : i32, i32
  }
  func.func @transform_1(%arg0: i32) -> (i32, i32) {
    %c0_i32 = arith.constant 0 : i32
    %c0_i32_0 = arith.constant 0 : i32
    return %arg0, %c0_i32 : i32, i32
  }
  func.func @transform_2(%arg0: i32) -> (i32, i32) {
    %c0_i32 = arith.constant 0 : i32
    %c0_i32_0 = arith.constant 0 : i32
    %c0_i32_1 = arith.constant 0 : i32
    return %c0_i32, %c0_i32_0 : i32, i32
  }
  func.func @transform_3(%arg0: i32) -> (i32, i32) {
    %c0_i32 = arith.constant 0 : i32
    %c0_i32_0 = arith.constant 0 : i32
    %c0_i32_1 = arith.constant 0 : i32
    return %c0_i32, %c0_i32_0 : i32, i32
  }
  func.func @transform_4(%arg0: i32) -> (i32, i32) {
    %c0_i32 = arith.constant 0 : i32
    %c0_i32_0 = arith.constant 0 : i32
    %c0_i32_1 = arith.constant 0 : i32
    return %c0_i32, %c0_i32_0 : i32, i32
  }
  func.func @transform_5(%arg0: i32) -> (i32, i32) {
    %c0_i32 = arith.constant 0 : i32
    %c0_i32_0 = arith.constant 0 : i32
    %c0_i32_1 = arith.constant 0 : i32
    return %c0_i32, %c0_i32_0 : i32, i32
  }
  func.func @transform_6(%arg0: i32) -> (i32, i32) {
    %c0_i32 = arith.constant 0 : i32
    %c0_i32_0 = arith.constant 0 : i32
    %c0_i32_1 = arith.constant 0 : i32
    return %c0_i32, %c0_i32_0 : i32, i32
  }
  func.func @transform_7(%arg0: i32) -> (i32, i32) {
    %c0_i32 = arith.constant 0 : i32
    %c0_i32_0 = arith.constant 0 : i32
    %c0_i32_1 = arith.constant 0 : i32
    return %c0_i32, %c0_i32_0 : i32, i32
  }
  func.func @transform_8(%arg0: i32) -> (i32, i32) {
    %c0_i32 = arith.constant 0 : i32
    %c0_i32_0 = arith.constant 0 : i32
    %c0_i32_1 = arith.constant 0 : i32
    return %c0_i32, %c0_i32_0 : i32, i32
  }
  func.func @transform_9(%arg0: i32) -> (i32, i32) {
    %c0_i32 = arith.constant 0 : i32
    %c0_i32_0 = arith.constant 0 : i32
    return %arg0, %c0_i32 : i32, i32
  }
}

</mosaic_0001>

<bundles_post_ra>
// kernel: tpu_custom_call.1
= control target key start
LH: loop header
LB: loop body
LE: loop exit
PB: predicated region body
PF: predicated region fallthrough
CT: control target
= control target key end

     0   :  { %s1036_s0 = inlined_call_operand.vmem [shape: f32[1,96], index: 0, kind: input, shape index: {}]   ;;  %s1037_s1 = inlined_call_operand.vmem [shape: f32[1,32], index: 1, kind: input, shape index: {}]   ;;  %s1038_s2 = inlined_call_operand.vmem [shape: f32[96,256], index: 2, kind: input, shape index: {}]   ;;  %s1039_s3 = inlined_call_operand.vmem [shape: f32[32,256], index: 3, kind: input, shape index: {}]   ;;  %s1040_s4 = inlined_call_operand.vmem [shape: f32[1,256], index: 4, kind: input, shape index: {}]   ;;  %s1041_s5 = inlined_call_operand.hbm [shape: f32[256,256], index: 5, kind: input, shape index: {}]   ;;  %s1042_s6 = inlined_call_operand.vmem [shape: f32[1,256], index: 6, kind: input, shape index: {}]   ;;  %s1043_s7 = inlined_call_operand.vmem [shape: f32[256,8], index: 7, kind: input, shape index: {}]   ;;  %s1044_s8 = inlined_call_operand.<no memory space> [shape: f32[1,1], index: 8, kind: input, shape index: {}]   ;;  %s1045_s9 = inlined_call_operand.hbm [shape: f32[1,8], index: 9, kind: output, shape index: {}]  }
   0x1   :  { %v14_v0 = vstv %s1044_s8 }
   0x2   :  { %15 = vst [vmem:[#allocation2] sm:$0x1] %v14_v0 }
   0x3   :  { %16 = vsyncpa [#allocation4], 0 }
   0x4   :  { %17 = vsyncpa [#allocation5], 0  ;;  %s749_s11 = smov [#allocation3]   ;;  %s701_s15 = scalar_lea.hbm %s1041_s5, 8192 }
   0x5   :  { %s33_s12 = sshll.u32 %s749_s11, 4  ;;  %p702_p0 = scmp.ne.s32.totalorder %s1041_s5, %s701_s15  ;;  %s34_s12 = int_to_ptr.vmem [resolvable:$true] %s33_s12 }
   0x6   :  { %p705_p1 = scmp.lt.u32.totalorder %s701_s15, %s1041_s5 }
   0x8   :  { %p707_p2 = pnand %p705_p1, %p702_p0 }
   0xa   :  { %710 = shalt.err (!%p707_p2)
}
   0xb   :  { %s711_s8 = scalar_lea.vmem %s34_s12, 8192  ;;  %p716_p4 = scmp.lt.s32.totalorder %s34_s12, %s34_s12 }
   0xc   :  { %p712_p3 = scmp.ne.s32.totalorder %s34_s12, %s711_s8  ;;  %p717_p5 = scmp.lt.s32.totalorder %s711_s8, %s711_s8 }
   0xe   :  { %p718_p6 = por %p717_p5, %p716_p4 }
  0x10   :  { %p719_p7 = pnand %p718_p6, %p712_p3 }
  0x12   :  { %722 = shalt.err (!%p719_p7)
}
  0x13   :  { %s750_s20 = smov 256   ;;  %s751_s21 = smov 16  }
  0x14   :  { %39 = dma.hbm_to_vmem [thread:$0]  %s1041_s5, 8192, %s34_s12, [#allocation4], %s750_s20, %s750_s20, %s751_s21  }
  0x15   :  { %745 = dma.done.wait [#allocation4], 8192  }
  0x16   :  { %746 = vsyncadd [#allocation4], 4294959104  ;;  %v752_v1 = vmov 0.0   ;;  %v76_v2 = vld [vmem:[%s1039_s3 + $0x8] sm:$0xff]  ;;  %v78_v3 = vld [vmem:[%s1039_s3 + $0x18] sm:$0xff]  ;;  %vm83_vm0 = vcmask 261120  }
  0x17   :  { %151 = vmatprep.mubr.f32.mxu0 %v752_v1  ;;  %v75_v4 = vld [vmem:[%s1039_s3] sm:$0xff]  ;;  %v564_v5 = vpack.c.bf16 %v78_v3, %v76_v2  ;;  %v77_v6 = vld [vmem:[%s1039_s3 + $0x10] sm:$0xff]  ;;  %v80_v7 = vld [vmem:[%s1039_s3 + $0x28] sm:$0xff]  ;;  %vm158_vm1 = vcmask 785408   ;;  %vm510_vm2 = vcmask 57344  }
  0x18   :  { %v82_v8 = vld [vmem:[%s1039_s3 + $0x38] sm:$0xff]  ;;  %v566_v9 = vpack.c.bf16 %v77_v6, %v75_v4  ;;  %v79_v11 = vld [vmem:[%s1039_s3 + $0x20] sm:$0xff]  ;;  %v81_v12 = vld [vmem:[%s1039_s3 + $0x30] sm:$0xff] }
  0x19   :  { %v568_v10 = vpack.c.bf16 %v82_v8, %v80_v7  ;;  %v51_v13 = vld [vmem:[%s1038_s2 + $0x8] sm:$0xff]  ;;  %565 = vmatprep.subr.bf16.mxu0 %v564_v5  ;;  %v53_v14 = vld [vmem:[%s1038_s2 + $0x18] sm:$0xff]  ;;  %v570_v15 = vpack.c.bf16 %v81_v12, %v79_v11  ;;  %v50_v17 = vld [vmem:[%s1038_s2] sm:$0xff] }
  0x1a   :  { %567 = vmatpush1.bf16.msra.mxu0 %v566_v9  ;;  %v572_v16 = vpack.c.bf16 %v53_v14, %v51_v13  ;;  %v52_v18 = vld [vmem:[%s1038_s2 + $0x10] sm:$0xff]  ;;  %v55_v19 = vld [vmem:[%s1038_s2 + $0x28] sm:$0xff]  ;;  %v57_v20 = vld [vmem:[%s1038_s2 + $0x38] sm:$0xff] }
  0x1b   :  { %569 = vmatprep.subr.bf16.mxu0 %v568_v10  ;;  %v74_v21 = vld [vmem:[%s1037_s1] sm:$0x1]  ;;  %v574_v22 = vpack.c.bf16 %v52_v18, %v50_v17  ;;  %v576_v23 = vpack.c.bf16 %v57_v20, %v55_v19  ;;  %v56_v25 = vld [vmem:[%s1038_s2 + $0x30] sm:$0xff]  ;;  %v59_v26 = vld [vmem:[%s1038_s2 + $0x48] sm:$0xff] }
  0x1c   :  { %v54_v24 = vld [vmem:[%s1038_s2 + $0x20] sm:$0xff]  ;;  %v61_v27 = vld [vmem:[%s1038_s2 + $0x58] sm:$0xff]  ;;  %v60_v29 = vld [vmem:[%s1038_s2 + $0x50] sm:$0xff] }
  0x1d   :  { %v58_v28 = vld [vmem:[%s1038_s2 + $0x40] sm:$0xff]  ;;  %v250_v30 = vld [vmem:[#allocation3 + $0x8] sm:$0xff]  ;;  %v578_v32 = vpack.c.bf16 %v56_v25, %v54_v24  ;;  %v251_v36 = vld [vmem:[#allocation3 + $0x10] sm:$0xff]  ;;  %v580_v38 = vpack.c.bf16 %v61_v27, %v59_v26 }
  0x1e   :  { %571 = vmatpush1.bf16.msra.mxu0 %v570_v15  ;;  %v252_v31 = vld [vmem:[#allocation3 + $0x18] sm:$0xff]  ;;  %v63_v33 = vld [vmem:[%s1038_s2 + $0x68] sm:$0xff]  ;;  %v255_v42 = vld [vmem:[#allocation3 + $0x30] sm:$0xff]  ;;  %v582_v48 = vpack.c.bf16 %v60_v29, %v58_v28 }
  0x1f   :  { %573 = vmatprep.subr.bf16.mxu0 %v572_v16  ;;  %v596_v34 = vpack.c.bf16 %v252_v31, %v250_v30  ;;  %v249_v35 = vld [vmem:[#allocation3] sm:$0xff]  ;;  %v254_v37 = vld [vmem:[#allocation3 + $0x28] sm:$0xff]  ;;  %v256_v40 = vld [vmem:[#allocation3 + $0x38] sm:$0xff] }
  0x20   :  { %v598_v39 = vpack.c.bf16 %v251_v36, %v249_v35  ;;  %v253_v41 = vld [vmem:[#allocation3 + $0x20] sm:$0xff]  ;;  %v65_v43 = vld [vmem:[%s1038_s2 + $0x78] sm:$0xff]  ;;  %v600_v44 = vpack.c.bf16 %v256_v40, %v254_v37  ;;  %v258_v45 = vld [vmem:[#allocation3 + $0x48] sm:$0xff] }
  0x21   :  { %527 = vmatmul.mubr.msk.f32.vlgmr.msra.gmra.mrb[0].mxu0 %vm83_vm0, %v74_v21  ;;  %597 = vmatprep.subr.bf16.mxu1 %v596_v34  ;;  %v260_v46 = vld [vmem:[#allocation3 + $0x58] sm:$0xff]  ;;  %v602_v47 = vpack.c.bf16 %v255_v42, %v253_v41  ;;  %v257_v51 = vld [vmem:[#allocation3 + $0x40] sm:$0xff]  ;;  %v259_v52 = vld [vmem:[#allocation3 + $0x50] sm:$0xff]  ;;  %v584_v53 = vpack.c.bf16 %v65_v43, %v63_v33 }
  0x22   :  { %575 = vmatpush1.bf16.msra.mxu0 %v574_v22  ;;  %226 = vmatprep.mubr.f32.mxu0 %v752_v1  ;;  %v62_v49 = vld [vmem:[%s1038_s2 + $0x60] sm:$0xff]  ;;  %v604_v50 = vpack.c.bf16 %v260_v46, %v258_v45  ;;  %v64_v54 = vld [vmem:[%s1038_s2 + $0x70] sm:$0xff]  ;;  %v67_v57 = vld [vmem:[%s1038_s2 + $0x88] sm:$0xff]  ;;  %v606_v59 = vpack.c.bf16 %v259_v52, %v257_v51 }
  0x23   :  { %577 = vmatprep.subr.bf16.mxu0 %v576_v23  ;;  %599 = vmatpush1.bf16.msra.mxu1 %v598_v39  ;;  %v262_v55 = vld [vmem:[#allocation3 + $0x68] sm:$0xff]  ;;  %v264_v56 = vld [vmem:[#allocation3 + $0x78] sm:$0xff]  ;;  %v586_v60 = vpack.c.bf16 %v64_v54, %v62_v49  ;;  %v261_v63 = vld [vmem:[#allocation3 + $0x60] sm:$0xff] }
  0x24   :  { %601 = vmatprep.subr.bf16.mxu1 %v600_v44  ;;  %v69_v58 = vld [vmem:[%s1038_s2 + $0x98] sm:$0xff]  ;;  %v66_v61 = vld [vmem:[%s1038_s2 + $0x80] sm:$0xff]  ;;  %v608_v62 = vpack.c.bf16 %v264_v56, %v262_v55  ;;  %v68_v2 = vld [vmem:[%s1038_s2 + $0x90] sm:$0xff] }
  0x25   :  { %v263_v0 = vld [vmem:[#allocation3 + $0x70] sm:$0xff]  ;;  %v588_v1 = vpack.c.bf16 %v69_v58, %v67_v57  ;;  %v266_v3 = vld [vmem:[#allocation3 + $0x88] sm:$0xff]  ;;  %v268_v4 = vld [vmem:[#allocation3 + $0x98] sm:$0xff]  ;;  %v590_v8 = vpack.c.bf16 %v68_v2, %v66_v61 }
  0x26   :  { %579 = vmatpush1.bf16.msra.mxu0 %v578_v32  ;;  %v71_v5 = vld [vmem:[%s1038_s2 + $0xa8] sm:$0xff]  ;;  %v73_v6 = vld [vmem:[%s1038_s2 + $0xb8] sm:$0xff]  ;;  %v610_v7 = vpack.c.bf16 %v263_v0, %v261_v63  ;;  %v70_v9 = vld [vmem:[%s1038_s2 + $0xa0] sm:$0xff]  ;;  %v612_v10 = vpack.c.bf16 %v268_v4, %v266_v3 }
  0x27   :  { %581 = vmatprep.subr.bf16.mxu0 %v580_v38  ;;  %603 = vmatpush1.bf16.msra.mxu1 %v602_v47  ;;  %v265_v11 = vld [vmem:[#allocation3 + $0x80] sm:$0xff]  ;;  %v267_v12 = vld [vmem:[#allocation3 + $0x90] sm:$0xff]  ;;  %v592_v13 = vpack.c.bf16 %v73_v6, %v71_v5  ;;  %v270_v15 = vld [vmem:[#allocation3 + $0xa8] sm:$0xff] }
  0x28   :  { %605 = vmatprep.subr.bf16.mxu1 %v604_v50  ;;  %v72_v14 = vld [vmem:[%s1038_s2 + $0xb0] sm:$0xff]  ;;  %v272_v16 = vld [vmem:[#allocation3 + $0xb8] sm:$0xff]  ;;  %v614_v17 = vpack.c.bf16 %v267_v12, %v265_v11  ;;  %v269_v20 = vld [vmem:[#allocation3 + $0xa0] sm:$0xff] }
  0x29   :  { %v594_v18 = vpack.c.bf16 %v72_v14, %v70_v9  ;;  %v616_v19 = vpack.c.bf16 %v272_v16, %v270_v15  ;;  %v271_v21 = vld [vmem:[#allocation3 + $0xb0] sm:$0xff]  ;;  %v274_v22 = vld [vmem:[#allocation3 + $0xc8] sm:$0xff]  ;;  %v276_v23 = vld [vmem:[#allocation3 + $0xd8] sm:$0xff] }
  0x2a   :  { %583 = vmatpush1.bf16.msra.mxu0 %v582_v48  ;;  %v618_v24 = vpack.c.bf16 %v271_v21, %v269_v20  ;;  %v49_v25 = vld [vmem:[%s1036_s0] sm:$0x1]  ;;  %v620_v26 = vpack.c.bf16 %v276_v23, %v274_v22  ;;  %v273_v27 = vld [vmem:[#allocation3 + $0xc0] sm:$0xff]  ;;  %v275_v28 = vld [vmem:[#allocation3 + $0xd0] sm:$0xff] }
  0x2b   :  { %585 = vmatprep.subr.bf16.mxu0 %v584_v53  ;;  %607 = vmatpush1.bf16.msra.mxu1 %v606_v59  ;;  %v278_v29 = vld [vmem:[#allocation3 + $0xe8] sm:$0xff]  ;;  %v280_v30 = vld [vmem:[#allocation3 + $0xf8] sm:$0xff]  ;;  %v622_v31 = vpack.c.bf16 %v275_v28, %v273_v27  ;;  %v277_v33 = vld [vmem:[#allocation3 + $0xe0] sm:$0xff] }
  0x2c   :  { %609 = vmatprep.subr.bf16.mxu1 %v608_v62  ;;  %v624_v32 = vpack.c.bf16 %v280_v30, %v278_v29  ;;  %v279_v34 = vld [vmem:[#allocation3 + $0xf0] sm:$0xff]  ;;  %v282_v35 = vld [vmem:[#allocation3 + $0x108] sm:$0xff]  ;;  %v284_v36 = vld [vmem:[#allocation3 + $0x118] sm:$0xff] }
  0x2d   :  { %v626_v37 = vpack.c.bf16 %v279_v34, %v277_v33  ;;  %v628_v38 = vpack.c.bf16 %v284_v36, %v282_v35  ;;  %v281_v39 = vld [vmem:[#allocation3 + $0x100] sm:$0xff]  ;;  %v283_v40 = vld [vmem:[#allocation3 + $0x110] sm:$0xff]  ;;  %v286_v41 = vld [vmem:[#allocation3 + $0x128] sm:$0xff] }
  0x2e   :  { %587 = vmatpush1.bf16.msra.mxu0 %v586_v60  ;;  %v288_v42 = vld [vmem:[#allocation3 + $0x138] sm:$0xff]  ;;  %v630_v43 = vpack.c.bf16 %v283_v40, %v281_v39  ;;  %v285_v45 = vld [vmem:[#allocation3 + $0x120] sm:$0xff]  ;;  %v287_v46 = vld [vmem:[#allocation3 + $0x130] sm:$0xff] }
  0x2f   :  { %589 = vmatprep.subr.bf16.mxu0 %v588_v1  ;;  %611 = vmatpush1.bf16.msra.mxu1 %v610_v7  ;;  %v632_v44 = vpack.c.bf16 %v288_v42, %v286_v41  ;;  %v290_v47 = vld [vmem:[#allocation3 + $0x148] sm:$0xff]  ;;  %v292_v48 = vld [vmem:[#allocation3 + $0x158] sm:$0xff]  ;;  %v634_v49 = vpack.c.bf16 %v287_v46, %v285_v45  ;;  %v289_v51 = vld [vmem:[#allocation3 + $0x140] sm:$0xff] }
  0x30   :  { %613 = vmatprep.subr.bf16.mxu1 %v612_v10  ;;  %v636_v50 = vpack.c.bf16 %v292_v48, %v290_v47  ;;  %v291_v52 = vld [vmem:[#allocation3 + $0x150] sm:$0xff]  ;;  %v294_v53 = vld [vmem:[#allocation3 + $0x168] sm:$0xff]  ;;  %v296_v54 = vld [vmem:[#allocation3 + $0x178] sm:$0xff] }
  0x31   :  { %v638_v55 = vpack.c.bf16 %v291_v52, %v289_v51  ;;  %v640_v56 = vpack.c.bf16 %v296_v54, %v294_v53  ;;  %v293_v57 = vld [vmem:[#allocation3 + $0x160] sm:$0xff]  ;;  %v295_v58 = vld [vmem:[#allocation3 + $0x170] sm:$0xff]  ;;  %v298_v59 = vld [vmem:[#allocation3 + $0x188] sm:$0xff] }
  0x32   :  { %591 = vmatpush1.bf16.msra.mxu0 %v590_v8  ;;  %v300_v60 = vld [vmem:[#allocation3 + $0x198] sm:$0xff]  ;;  %v642_v61 = vpack.c.bf16 %v295_v58, %v293_v57  ;;  %v297_v63 = vld [vmem:[#allocation3 + $0x180] sm:$0xff]  ;;  %v299_v0 = vld [vmem:[#allocation3 + $0x190] sm:$0xff] }
  0x33   :  { %593 = vmatprep.subr.bf16.mxu0 %v592_v13  ;;  %615 = vmatpush1.bf16.msra.mxu1 %v614_v17  ;;  %v644_v62 = vpack.c.bf16 %v300_v60, %v298_v59  ;;  %v302_v1 = vld [vmem:[#allocation3 + $0x1a8] sm:$0xff]  ;;  %v304_v2 = vld [vmem:[#allocation3 + $0x1b8] sm:$0xff]  ;;  %v646_v3 = vpack.c.bf16 %v299_v0, %v297_v63  ;;  %v301_v5 = vld [vmem:[#allocation3 + $0x1a0] sm:$0xff]  ;;  %v235_v59 = vlaneseq }
  0x34   :  { %617 = vmatprep.subr.bf16.mxu1 %v616_v19  ;;  %v648_v4 = vpack.c.bf16 %v304_v2, %v302_v1  ;;  %v303_v6 = vld [vmem:[#allocation3 + $0x1b0] sm:$0xff]  ;;  %v306_v7 = vld [vmem:[#allocation3 + $0x1c8] sm:$0xff]  ;;  %v308_v8 = vld [vmem:[#allocation3 + $0x1d8] sm:$0xff] }
  0x35   :  { %v650_v9 = vpack.c.bf16 %v303_v6, %v301_v5  ;;  %v652_v10 = vpack.c.bf16 %v308_v8, %v306_v7  ;;  %v305_v11 = vld [vmem:[#allocation3 + $0x1c0] sm:$0xff]  ;;  %v307_v12 = vld [vmem:[#allocation3 + $0x1d0] sm:$0xff]  ;;  %v310_v14 = vld [vmem:[#allocation3 + $0x1e8] sm:$0xff]  ;;  %v236_v60 = vshrl.u32 %v235_v59, 7 }
  0x36   :  { %595 = vmatpush1.bf16.msra.mxu0 %v594_v18  ;;  %v654_v13 = vpack.c.bf16 %v307_v12, %v305_v11  ;;  %v312_v15 = vld [vmem:[#allocation3 + $0x1f8] sm:$0xff]  ;;  %v309_v17 = vld [vmem:[#allocation3 + $0x1e0] sm:$0xff]  ;;  %v311_v18 = vld [vmem:[#allocation3 + $0x1f0] sm:$0xff] }
  0x37   :  { %619 = vmatpush1.bf16.msra.mxu1 %v618_v24  ;;  %v656_v16 = vpack.c.bf16 %v312_v15, %v310_v14  ;;  %v658_v19 = vpack.c.bf16 %v311_v18, %v309_v17  ;;  %v414_v20 = vld [vmem:[%s1043_s7 + $0x80] sm:$0xff]  ;;  %v415_v21 = vld [vmem:[%s1043_s7 + $0x88] sm:$0xff]  ;;  %v400_v29 = vld [vmem:[%s1043_s7 + $0x10] sm:$0xff]  ;;  %v241_v63 = vsub.s32 1, %v236_v60  ;;  %v753_v18 = vmov 0  }
  0x38   :  { %621 = vmatprep.subr.bf16.mxu1 %v620_v26  ;;  %v398_v22 = vld [vmem:[%s1043_s7] sm:$0xff]  ;;  %v660_v23 = vpack.c.bf16 %v415_v21, %v414_v20  ;;  %v399_v24 = vld [vmem:[%s1043_s7 + $0x8] sm:$0xff]  ;;  %v417_v26 = vld [vmem:[%s1043_s7 + $0x98] sm:$0xff]  ;;  %700 = vset.pattern.permute.xlu0 %v753_v18 }
  0x39   :  { %528 = vmatmul.mubr.msk.f32.vlgmr.msra.gmra.mrb[0].mxu0 %vm158_vm1, %v49_v25  ;;  %v416_v25 = vld [vmem:[%s1043_s7 + $0x90] sm:$0xff]  ;;  %v662_v27 = vpack.c.bf16 %v399_v24, %v398_v22  ;;  %v401_v30 = vld [vmem:[%s1043_s7 + $0x18] sm:$0xff]  ;;  %v402_v35 = vld [vmem:[%s1043_s7 + $0x20] sm:$0xff] }
  0x3a   :  { %v664_v28 = vpack.c.bf16 %v417_v26, %v416_v25  ;;  %661 = vmatprep.subr.bf16.mxu0 %v660_v23  ;;  %v666_v33 = vpack.c.bf16 %v401_v30, %v400_v29  ;;  %v403_v36 = vld [vmem:[%s1043_s7 + $0x28] sm:$0xff]  ;;  %v404_v41 = vld [vmem:[%s1043_s7 + $0x30] sm:$0xff]  ;;  %v405_v42 = vld [vmem:[%s1043_s7 + $0x38] sm:$0xff] }
  0x3b   :  { %623 = vmatpush1.bf16.msra.mxu1 %v622_v31  ;;  %v418_v31 = vld [vmem:[%s1043_s7 + $0xa0] sm:$0xff]  ;;  %663 = vmatpush3.bf16.msra.mxu0 %v662_v27  ;;  %v670_v39 = vpack.c.bf16 %v403_v36, %v402_v35  ;;  %v674_v45 = vpack.c.bf16 %v405_v42, %v404_v41  ;;  %v407_v48 = vld [vmem:[%s1043_s7 + $0x48] sm:$0xff]  ;;  %v408_v53 = vld [vmem:[%s1043_s7 + $0x50] sm:$0xff] }
  0x3c   :  { %625 = vmatprep.subr.bf16.mxu1 %v624_v32  ;;  %v419_v32 = vld [vmem:[%s1043_s7 + $0xa8] sm:$0xff]  ;;  %665 = vmatprep.subr.bf16.mxu0 %v664_v28  ;;  %v406_v47 = vld [vmem:[%s1043_s7 + $0x40] sm:$0xff]  ;;  %v409_v54 = vld [vmem:[%s1043_s7 + $0x58] sm:$0xff] }
  0x3d   :  { %v668_v34 = vpack.c.bf16 %v419_v32, %v418_v31  ;;  %v678_v51 = vpack.c.bf16 %v407_v48, %v406_v47  ;;  %v682_v57 = vpack.c.bf16 %v409_v54, %v408_v53  ;;  %v410_v8 = vld [vmem:[%s1043_s7 + $0x60] sm:$0xff]  ;;  %v428_v11 = vld [vmem:[%s1043_s7 + $0xf0] sm:$0xff]  ;;  %v429_v12 = vld [vmem:[%s1043_s7 + $0xf8] sm:$0xff] }
  0x3e   :  { %v412_v14 = vld [vmem:[%s1043_s7 + $0x70] sm:$0xff]  ;;  %v413_v15 = vld [vmem:[%s1043_s7 + $0x78] sm:$0xff]  ;;  %v430_v17 = vld [vmem:[#allocation2] sm:$0x1] }
  0x3f   :  { %627 = vmatpush1.bf16.msra.mxu1 %v626_v37  ;;  %v420_v37 = vld [vmem:[%s1043_s7 + $0xb0] sm:$0xff]  ;;  %667 = vmatpush3.bf16.msra.mxu0 %v666_v33 }
  0x40   :  { %629 = vmatprep.subr.bf16.mxu1 %v628_v38  ;;  %v421_v38 = vld [vmem:[%s1043_s7 + $0xb8] sm:$0xff]  ;;  %669 = vmatprep.subr.bf16.mxu0 %v668_v34 }
  0x41   :  { %v672_v40 = vpack.c.bf16 %v421_v38, %v420_v37  ;;  %433 = vperm.xlu0 %700, %v430_v17  }
  0x43   :  { %631 = vmatpush1.bf16.msra.mxu1 %v630_v43  ;;  %v422_v43 = vld [vmem:[%s1043_s7 + $0xc0] sm:$0xff]  ;;  %671 = vmatpush3.bf16.msra.mxu0 %v670_v39 }
  0x44   :  { %633 = vmatprep.subr.bf16.mxu1 %v632_v44  ;;  %v423_v44 = vld [vmem:[%s1043_s7 + $0xc8] sm:$0xff]  ;;  %673 = vmatprep.subr.bf16.mxu0 %v672_v40 }
  0x45   :  { %v676_v46 = vpack.c.bf16 %v423_v44, %v422_v43 }
  0x47   :  { %635 = vmatpush1.bf16.msra.mxu1 %v634_v49  ;;  %v424_v49 = vld [vmem:[%s1043_s7 + $0xd0] sm:$0xff]  ;;  %675 = vmatpush3.bf16.msra.mxu0 %v674_v45 }
  0x48   :  { %637 = vmatprep.subr.bf16.mxu1 %v636_v50  ;;  %v425_v50 = vld [vmem:[%s1043_s7 + $0xd8] sm:$0xff]  ;;  %677 = vmatprep.subr.bf16.mxu0 %v676_v46 }
  0x49   :  { %v680_v52 = vpack.c.bf16 %v425_v50, %v424_v49 }
  0x4b   :  { %639 = vmatpush1.bf16.msra.mxu1 %v638_v55  ;;  %v426_v55 = vld [vmem:[%s1043_s7 + $0xe0] sm:$0xff]  ;;  %679 = vmatpush3.bf16.msra.mxu0 %v678_v51 }
  0x4c   :  { %641 = vmatprep.subr.bf16.mxu1 %v640_v56  ;;  %v427_v56 = vld [vmem:[%s1043_s7 + $0xe8] sm:$0xff]  ;;  %681 = vmatprep.subr.bf16.mxu0 %v680_v52 }
  0x4d   :  { %v684_v58 = vpack.c.bf16 %v427_v56, %v426_v55 }
  0x4f   :  { %643 = vmatpush1.bf16.msra.mxu1 %v642_v61  ;;  %683 = vmatpush3.bf16.msra.mxu0 %v682_v57  ;;  %v237_v61 = vsub.s32 0, %v236_v60 }
  0x50   :  { %645 = vmatprep.subr.bf16.mxu1 %v644_v62  ;;  %685 = vmatprep.subr.bf16.mxu0 %v684_v58  ;;  %v233_v62 = vld [vmem:[%s1040_s4] sm:$0x3] }
  0x51   :  { %v238_v0 = vrot.slane %v233_v62, %v237_v61  ;;  %v242_v1 = vrot.slane %v233_v62, %v241_v63 }
  0x53   :  { %647 = vmatpush1.bf16.msra.mxu1 %v646_v3 }
  0x54   :  { %649 = vmatprep.subr.bf16.mxu1 %v648_v4 }
  0x57   :  { %651 = vmatpush1.bf16.msra.mxu1 %v650_v9  ;;  %v411_v9 = vld [vmem:[%s1043_s7 + $0x68] sm:$0xff]  ;;  %s754_s7 = smov [#allocation6]  }
  0x58   :  { %653 = vmatprep.subr.bf16.mxu1 %v652_v10  ;;  %v686_v10 = vpack.c.bf16 %v411_v9, %v410_v8  ;;  %s518_s29 = sshll.u32 %s754_s7, 4  ;;  %s519_s29 = int_to_ptr.vmem [resolvable:$true] %s518_s29 }
  0x59   :  { %s727_s30 = scalar_lea.vmem %s519_s29, 32  ;;  %p728_p9 = scmp.lt.s32.totalorder %s519_s29, %s519_s29 }
  0x5a   :  { %687 = vmatpush3.bf16.msra.mxu0 %v686_v10 }
  0x5b   :  { %655 = vmatpush1.bf16.msra.mxu1 %v654_v13  ;;  %v688_v13 = vpack.c.bf16 %v429_v12, %v428_v11 }
  0x5c   :  { %657 = vmatprep.subr.bf16.mxu1 %v656_v16  ;;  %v690_v16 = vpack.c.bf16 %v413_v15, %v412_v14 }
  0x5d   :  { %689 = vmatprep.subr.bf16.mxu0 %v688_v13 }
  0x5e   :  { %691 = vmatpush3.bf16.msra.mxu0 %v690_v16 }
  0x5f   :  { %659 = vmatpush1.bf16.msra.mxu1 %v658_v19  ;;  %v313_v19 = vld [vmem:[%s1042_s6] sm:$0x3]  ;;  %s723_s6 = scalar_lea.vmem %s519_s29, 16 }
  0x60   :  { %v318_v20 = vrot.slane %v313_v19, %v237_v61  ;;  %v322_v21 = vrot.slane %v313_v19, %v241_v63  ;;  %p724_p8 = scmp.ne.s32.totalorder %s519_s29, %s723_s6  ;;  %p729_p10 = scmp.lt.s32.totalorder %s727_s30, %s723_s6 }
  0x62   :  { %p730_p11 = por %p729_p10, %p728_p9 }
  0x64   :  { %p731_p12 = pnand %p730_p11, %p724_p8 }
  0xc0   :  { %v434_v28 = vpop.permute.xlu0 %433 }
  0xc1   :  { %v439_v30 = vrot.slane %v434_v28, %v237_v61 }
 0x10c   :  { %v228_v2 = vpop.f32.mrb[0].mxu0 }
 0x10d   :  { %v245_v3 = vadd.f32 %v238_v0, %v228_v2  ;;  %v230_v4 = vpop.f32.mrb[1].mxu0 }
 0x10e   :  { %v246_v5 = vadd.f32 %v242_v1, %v230_v4 }
 0x10f   :  { %v247_v7 = vmax.f32 %v245_v3, 0.0 }
 0x110   :  { %v248_v6 = vmax.f32 %v246_v5, 0.0 }
 0x112   :  { %389 = vmatprep.mubr.f32.mxu1 %v248_v6 }
 0x113   :  { %390 = vmatmul.mubr.f32.vlgmr.msra.gmra.mrb[0].mxu1 %v247_v7 }
 0x1e6   :  { %v391_v22 = vpop.f32.mrb[0].mxu1 }
 0x1e7   :  { %v392_v23 = vadd.f32 %v391_v22, %v318_v20  ;;  %v393_v24 = vpop.f32.mrb[1].mxu1 }
 0x1e8   :  { %v394_v25 = vadd.f32 %v393_v24, %v322_v21 }
 0x1e9   :  { %v396_v27 = vmax.f32 %v392_v23, 0.0 }
 0x1ea   :  { %v397_v26 = vmax.f32 %v394_v25, 0.0 }
 0x1ec   :  { %504 = vmatprep.mubr.f32.mxu0 %v397_v26 }
 0x1ed   :  { %505 = vmatmul.mubr.f32.vlgmr.msra.gmra.mrb[2].mxu0 %v396_v27 }
 0x2c0   :  { %v561_v29 = vpop.f32.mrb[2].mxu0 }
 0x2c1   :  { %v562_v31 = vpop.f32.mrb[3].mxu0 }
 0x2c2   :  { %v563_v32 = vadd.f32 %v562_v31, %v561_v29 }
 0x2c4   :  { %v507_v33 = vadd.f32 %v563_v32, %v439_v30 }
 0x2c6   :  { %511 = vst.msk [vmem:[#allocation6] sm:$0x1] %vm510_vm2, %v507_v33 }
 0x2c7   :  { %734 = shalt.err (!%p731_p12)
}
 0x2c8   :  { %s735_s11 = scalar_lea.hbm %s1045_s9, 16 }
 0x2c9   :  { %p736_p13 = scmp.ne.s32.totalorder %s1045_s9, %s735_s11  ;;  %p739_p0 = scmp.lt.u32.totalorder %s735_s11, %s1045_s9 }
 0x2cb   :  { %p741_p1 = pnand %p739_p0, %p736_p13 }
 0x2cd   :  { %744 = shalt.err (!%p741_p1)
}
 0x2ce   :  { %521 = dma.vmem_to_hbm [thread:$0]  %s519_s29, 16, %s1045_s9, [#allocation5]  }
 0x2cf   :  { %747 = dma.done.wait [#allocation5], 16  }
 0x2d0   :  { %748 = vsyncadd [#allocation5], 4294967280 }
 0x2d1   :  { %525 = vsyncpa [#allocation4], 1 }
 0x2d2   :  { %526 = vsyncpa [#allocation5], 1 }

</bundles_post_ra>
